<compile_context>
chip_gen: v7x
topology: tpu7x:2x2x1
jax: 0.10.0
libtpu: 0.0.40
codegen_flags: <defaults>
</compile_context>

<pallas_src>
import functools

import jax
import jax.numpy as jnp
from jax.experimental import pallas as pl
from jax.experimental.pallas import tpu as pltpu


# ---------------------------------------------------------------------------
# Fused Pallas kernel
# ---------------------------------------------------------------------------
def _sab_kernel(x_ref, y_ref,
                w3_ref, s1_ref, b1_ref, w1_ref, s2_ref, b2_ref,
                w3a_ref, s1a_ref, b1a_ref, w1a_ref, s2a_ref, b2a_ref,
                sh_ref, up_ref,
                out_ref,
                xpad_ref, ypad_ref,
                *, B, H, W, C_in, C_out, matmul_dtype):
    f32 = jnp.float32

    def mm(a, b):
        # Optionally feed the MXU bf16 operands (v6e/v7x); accumulate in f32.
        if matmul_dtype is not None:
            a = a.astype(matmul_dtype)
            b = b.astype(matmul_dtype)
        return jnp.dot(a, b, preferred_element_type=f32)

    def conv_branch(src_ref, pad_ref, h, w, wb_ref, s1, b1, w1b, s2, b2, act):
        # "same" padding along H via a zeroed VMEM scratch; padding along W is
        # already folded into zero taps of the banded weights.
        pad_ref[...] = jnp.zeros_like(pad_ref)
        pad_ref[:, 1:h + 1, :] = src_ref[...]
        k = w * C_in
        # 3x3 conv == 3 row-shifted matmuls (K = W*C_in, N = W*C_out).
        acc = mm(pad_ref[:, 0:h, :].reshape(B * h, k), wb_ref[0])
        acc = acc + mm(pad_ref[:, 1:h + 1, :].reshape(B * h, k), wb_ref[1])
        acc = acc + mm(pad_ref[:, 2:h + 2, :].reshape(B * h, k), wb_ref[2])
        z = jnp.maximum(acc * s1[...] + b1[...], 0.0)        # BN1 + ReLU (f32)
        z = mm(z, w1b[...])                                   # 1x1 conv (block-diag)
        z = z * s2[...] + b2[...]                             # BN2
        return jnp.maximum(z, 0.0) if act == "relu" else jax.nn.sigmoid(z)

    Hp, Wp = H // 2, W // 2

    # Residual branch: (B*H, W*C_out), lane-dense.
    x_res = conv_branch(x_ref, xpad_ref, H, W,
                        w3_ref, s1_ref, b1_ref, w1_ref, s2_ref, b2_ref, "relu")
    # Attention branch on the pooled input: (B*Hp, Wp*C_out).
    att = conv_branch(y_ref, ypad_ref, Hp, Wp,
                      w3a_ref, s1a_ref, b1a_ref, w1a_ref, s2a_ref, b2a_ref,
                      "sigmoid")

    # 2x nearest upsample via selection matmuls (row duplication, then lane
    # duplication), fused with the final y * x_res + y epilogue.
    att_up = mm(mm(sh_ref[...], att), up_ref[...])            # (B*H, W*C_out)
    out_ref[...] = att_up * x_res + att_up


# ---------------------------------------------------------------------------
# Wrapper-side parameter re-packing (done once per call, constant under jit)
# ---------------------------------------------------------------------------
def _banded_conv_weight(w3, w_out, c_in, c_out):
    """(3,3,C_in,C_out) HWIO conv weight -> (3, W*C_in, W*C_out) banded mats.

    Wb[dy][t*C_in + ci, j*C_out + co] = w3[dy, t - j + 1, ci, co] when
    |t - j| <= 1, else 0 (i.e. the width taps + 'same' zero padding folded in).
    """
    t = jnp.arange(w_out)[:, None]                    # input column
    j = jnp.arange(w_out)[None, :]                    # output column
    dx = t - j + 1
    valid = (dx >= 0) & (dx <= 2)
    wg = w3[:, jnp.clip(dx, 0, 2)]                    # (3, W, W, C_in, C_out)
    wg = jnp.where(valid[None, :, :, None, None], wg, 0.0)
    return wg.transpose(0, 1, 3, 2, 4).reshape(3, w_out * c_in, w_out * c_out)


def _pack_branch(p, w_out):
    c_in, c_out = p["w3"].shape[2], p["w3"].shape[3]
    wb = _banded_conv_weight(p["w3"], w_out, c_in, c_out)
    w1b = jnp.kron(jnp.eye(w_out, dtype=jnp.float32), p["w1"])   # block-diag 1x1
    s1 = jnp.tile(p["s1"], w_out)[None, :]
    b1 = jnp.tile(p["b1"], w_out)[None, :]
    s2 = jnp.tile(p["s2"], w_out)[None, :]
    b2 = jnp.tile(p["b2"], w_out)[None, :]
    return wb, s1, b1, w1b, s2, b2


def _upsample_mats(B, H, W, C_out):
    """0/1 selection matrices implementing the exact 2x nearest upsample."""
    Hp, Wp = H // 2, W // 2
    r = jnp.arange(B * H)
    src_r = (r // H) * Hp + (r % H) // 2
    sh = (src_r[:, None] == jnp.arange(B * Hp)[None, :]).astype(jnp.float32)
    l = jnp.arange(W * C_out)
    src_l = (l // C_out // 2) * C_out + (l % C_out)
    up = (jnp.arange(Wp * C_out)[:, None] == src_l[None, :]).astype(jnp.float32)
    return sh, up                                     # (B*H, B*Hp), (Wp*C, W*C)


# ---------------------------------------------------------------------------
# SqueezeAttentionBlock forward
# ---------------------------------------------------------------------------
def squeeze_attention_block(x_nchw, params, *, matmul_dtype=None):
    B, C_in, H, W = x_nchw.shape
    if H % 2 or W % 2:
        raise ValueError("H and W must be even (AvgPool2d(2) + exact 2x upsample).")
    Hp, Wp = H // 2, W // 2
    C_out = params["conv"]["w3"].shape[3]

    # Layout glue (XLA): NCHW -> lane-major "row" layout (B, H, W*C).
    x_nhwc = jnp.transpose(x_nchw, (0, 2, 3, 1)).astype(jnp.float32)
    x_rows = x_nhwc.reshape(B, H, W * C_in)
    # AvgPool2d(2) kept as tiny XLA glue; it fuses with the transpose above.
    y_rows = x_nhwc.reshape(B, Hp, 2, Wp, 2, C_in).mean(axis=(2, 4)).reshape(
        B, Hp, Wp * C_in)

    conv_args = _pack_branch(params["conv"], W)
    att_args = _pack_branch(params["conv_atten"], Wp)
    sh, up = _upsample_mats(B, H, W, C_out)

    kernel = functools.partial(_sab_kernel, B=B, H=H, W=W, C_in=C_in,
                               C_out=C_out, matmul_dtype=matmul_dtype)

    def _full(shape):
        zeros = (0,) * len(shape)
        return pl.BlockSpec(shape, lambda i, _z=zeros: _z)

    inputs = (x_rows, y_rows) + conv_args + att_args + (sh, up)
    out_rows = pl.pallas_call(
        kernel,
        out_shape=jax.ShapeDtypeStruct((B * H, W * C_out), jnp.float32),
        grid=(1,),
        in_specs=[_full(a.shape) for a in inputs],
        out_specs=_full((B * H, W * C_out)),
        scratch_shapes=[pltpu.VMEM((B, H + 2, W * C_in), jnp.float32),
                        pltpu.VMEM((B, Hp + 2, Wp * C_in), jnp.float32)],
        compiler_params=pltpu.CompilerParams(
            dimension_semantics=("arbitrary",)),
    )(*inputs)

    out = out_rows.reshape(B, H, W, C_out)
    return jnp.transpose(out, (0, 3, 1, 2))            # NHWC -> NCHW


# ---------------------------------------------------------------------------
# Deterministic parameters (BatchNorm eval-mode folded to scale/bias)
# ---------------------------------------------------------------------------
def _bn_fold(key, c):
    k1, k2, k3, k4 = jax.random.split(key, 4)
    gamma = 1.0 + 0.1 * jax.random.normal(k1, (c,), jnp.float32)
    beta = 0.1 * jax.random.normal(k2, (c,), jnp.float32)
    mean = 0.1 * jax.random.normal(k3, (c,), jnp.float32)
    var = 0.5 + 0.5 * jnp.abs(jax.random.normal(k4, (c,), jnp.float32))
    scale = gamma / jnp.sqrt(var + 1e-5)
    bias = beta - mean * scale
    return scale, bias


def init_params(key, ch_in, ch_out):
    ks = jax.random.split(key, 8)

    def branch(keys):
        w3 = 0.2 * jax.random.normal(keys[0], (3, 3, ch_in, ch_out), jnp.float32)
        s1, b1 = _bn_fold(keys[1], ch_out)
        w1 = 0.2 * jax.random.normal(keys[2], (ch_out, ch_out), jnp.float32)
        s2, b2 = _bn_fold(keys[3], ch_out)
        return dict(w3=w3, s1=s1, b1=b1, w1=w1, s2=s2, b2=b2)

    return {"conv": branch(ks[:4]), "conv_atten": branch(ks[4:])}


# ---------------------------------------------------------------------------
# Pure-JAX reference (correctness check)
# ---------------------------------------------------------------------------
def _conv_block_ref(x, p, final_act):
    hi = jax.lax.Precision.HIGHEST
    y = jax.lax.conv_general_dilated(
        x, p["w3"], (1, 1), "SAME",
        dimension_numbers=("NHWC", "HWIO", "NHWC"), precision=hi)
    y = jnp.maximum(y * p["s1"] + p["b1"], 0.0)
    y = jnp.einsum("bhwc,cd->bhwd", y, p["w1"], precision=hi)
    y = y * p["s2"] + p["b2"]
    return jnp.maximum(y, 0.0) if final_act == "relu" else jax.nn.sigmoid(y)


def _reference(x_nchw, params):
    x = jnp.transpose(x_nchw, (0, 2, 3, 1))
    B, H, W, C_in = x.shape
    x_res = _conv_block_ref(x, params["conv"], "relu")
    y = x.reshape(B, H // 2, 2, W // 2, 2, C_in).mean(axis=(2, 4))
    y = _conv_block_ref(y, params["conv_atten"], "sigmoid")
    y_up = jnp.repeat(jnp.repeat(y, 2, axis=1), 2, axis=2)
    out = y_up * x_res + y_up
    return jnp.transpose(out, (0, 3, 1, 2))


# ---------------------------------------------------------------------------
if __name__ == "__main__":
    key = jax.random.PRNGKey(0)
    kx, kp = jax.random.split(key)

    B, C_in, C_out, H, W = 2, 4, 8, 16, 16
    x = jax.random.normal(kx, (B, C_in, H, W), jnp.float32)
    params = init_params(kp, C_in, C_out)

    fwd = jax.jit(squeeze_attention_block)
    out = jax.block_until_ready(fwd(x, params))
    assert out.shape == (B, C_out, H, W), out.shape

    ref = _reference(x, params)
    max_err = jnp.max(jnp.abs(out - ref))
    # Tolerance covers MXU pass-precision differences vs. the XLA reference.
    if not jnp.allclose(out, ref, atol=1e-2, rtol=1e-2):
        raise AssertionError(f"Pallas result mismatch, max abs err = {max_err}")

    print("KERNEL_OK")
</pallas_src>

<mosaic_0001>
module attributes {stable_mosaic.version = 11 : i64} {
  func.func @_sab_kernel(%arg0: i32, %arg1: memref<2x16x64xf32, #tpu.memory_space<vmem>>, %arg2: memref<2x8x32xf32, #tpu.memory_space<vmem>>, %arg3: memref<3x64x128xf32, #tpu.memory_space<vmem>>, %arg4: memref<1x128xf32, #tpu.memory_space<vmem>>, %arg5: memref<1x128xf32, #tpu.memory_space<vmem>>, %arg6: memref<128x128xf32, #tpu.memory_space<vmem>>, %arg7: memref<1x128xf32, #tpu.memory_space<vmem>>, %arg8: memref<1x128xf32, #tpu.memory_space<vmem>>, %arg9: memref<3x32x64xf32, #tpu.memory_space<vmem>>, %arg10: memref<1x64xf32, #tpu.memory_space<vmem>>, %arg11: memref<1x64xf32, #tpu.memory_space<vmem>>, %arg12: memref<64x64xf32, #tpu.memory_space<vmem>>, %arg13: memref<1x64xf32, #tpu.memory_space<vmem>>, %arg14: memref<1x64xf32, #tpu.memory_space<vmem>>, %arg15: memref<32x16xf32, #tpu.memory_space<vmem>>, %arg16: memref<64x128xf32, #tpu.memory_space<vmem>>, %arg17: memref<32x128xf32, #tpu.memory_space<vmem>>, %arg18: memref<2x18x64xf32, #tpu.memory_space<vmem>>, %arg19: memref<2x10x32xf32, #tpu.memory_space<vmem>>) attributes {dimension_semantics = [#tpu.dimension_semantics<arbitrary>], iteration_bounds = array<i64: 1>, scalar_prefetch = 0 : i64, scratch_operands = 2 : i64, tpu.core_type = #tpu.core_type<tc>, window_params = [{pipeline_mode = #tpu.pipeline_mode<synchronous>, transform_indices = @transform_0, window_bounds = array<i64: 2, 16, 64>}, {pipeline_mode = #tpu.pipeline_mode<synchronous>, transform_indices = @transform_1, window_bounds = array<i64: 2, 8, 32>}, {pipeline_mode = #tpu.pipeline_mode<synchronous>, transform_indices = @transform_2, window_bounds = array<i64: 3, 64, 128>}, {pipeline_mode = #tpu.pipeline_mode<synchronous>, transform_indices = @transform_3, window_bounds = array<i64: 1, 128>}, {pipeline_mode = #tpu.pipeline_mode<synchronous>, transform_indices = @transform_4, window_bounds = array<i64: 1, 128>}, {pipeline_mode = #tpu.pipeline_mode<synchronous>, transform_indices = @transform_5, window_bounds = array<i64: 128, 128>}, {pipeline_mode = #tpu.pipeline_mode<synchronous>, transform_indices = @transform_6, window_bounds = array<i64: 1, 128>}, {pipeline_mode = #tpu.pipeline_mode<synchronous>, transform_indices = @transform_7, window_bounds = array<i64: 1, 128>}, {pipeline_mode = #tpu.pipeline_mode<synchronous>, transform_indices = @transform_8, window_bounds = array<i64: 3, 32, 64>}, {pipeline_mode = #tpu.pipeline_mode<synchronous>, transform_indices = @transform_9, window_bounds = array<i64: 1, 64>}, {pipeline_mode = #tpu.pipeline_mode<synchronous>, transform_indices = @transform_10, window_bounds = array<i64: 1, 64>}, {pipeline_mode = #tpu.pipeline_mode<synchronous>, transform_indices = @transform_11, window_bounds = array<i64: 64, 64>}, {pipeline_mode = #tpu.pipeline_mode<synchronous>, transform_indices = @transform_12, window_bounds = array<i64: 1, 64>}, {pipeline_mode = #tpu.pipeline_mode<synchronous>, transform_indices = @transform_13, window_bounds = array<i64: 1, 64>}, {pipeline_mode = #tpu.pipeline_mode<synchronous>, transform_indices = @transform_14, window_bounds = array<i64: 32, 16>}, {pipeline_mode = #tpu.pipeline_mode<synchronous>, transform_indices = @transform_15, window_bounds = array<i64: 64, 128>}, {pipeline_mode = #tpu.pipeline_mode<synchronous>, transform_indices = @transform_16, window_bounds = array<i64: 32, 128>}]} {
    %cst = arith.constant 0.000000e+00 : f32
    %0 = vector.broadcast %cst : f32 to vector<2x18x64xf32>
    %c0 = arith.constant 0 : index
    %c0_0 = arith.constant 0 : index
    %c0_1 = arith.constant 0 : index
    %1 = vector.load %arg18[%c0, %c0_0, %c0_1] : memref<2x18x64xf32, #tpu.memory_space<vmem>>, vector<2x18x64xf32>
    tpu.vector_store %arg18[%c0, %c0_0, %c0_1], %0 {strides = array<i32>} : memref<2x18x64xf32, #tpu.memory_space<vmem>>, vector<2x18x64xf32>,
    %c0_2 = arith.constant 0 : index
    %c0_3 = arith.constant 0 : index
    %c0_4 = arith.constant 0 : index
    %2 = vector.load %arg1[%c0_2, %c0_3, %c0_4] : memref<2x16x64xf32, #tpu.memory_space<vmem>>, vector<2x16x64xf32>
    %c0_5 = arith.constant 0 : index
    %c1 = arith.constant 1 : index
    %c0_6 = arith.constant 0 : index
    %3 = vector.load %arg18[%c0_5, %c1, %c0_6] : memref<2x18x64xf32, #tpu.memory_space<vmem>>, vector<2x16x64xf32>
    tpu.vector_store %arg18[%c0_5, %c1, %c0_6], %2 {strides = array<i32>} : memref<2x18x64xf32, #tpu.memory_space<vmem>>, vector<2x16x64xf32>,
    %c0_7 = arith.constant 0 : index
    %c0_8 = arith.constant 0 : index
    %c0_9 = arith.constant 0 : index
    %4 = vector.load %arg18[%c0_7, %c0_8, %c0_9] : memref<2x18x64xf32, #tpu.memory_space<vmem>>, vector<2x16x64xf32>
    %5 = vector.shape_cast %4 : vector<2x16x64xf32> to vector<32x64xf32>
    %c0_10 = arith.constant 0 : index
    %c0_11 = arith.constant 0 : index
    %c0_12 = arith.constant 0 : index
    %6 = vector.load %arg3[%c0_10, %c0_11, %c0_12] : memref<3x64x128xf32, #tpu.memory_space<vmem>>, vector<1x64x128xf32>
    %7 = vector.shape_cast %6 : vector<1x64x128xf32> to vector<64x128xf32>
    %cst_13 = arith.constant dense<0.000000e+00> : vector<32x128xf32>
    %8 = tpu.matmul %5, %7, %cst_13 {dimension_numbers = #tpu.dot_dimension_numbers<[1], [0], [0], [1], [0, 0, 1, 1], [], []>} : vector<32x64xf32>, vector<64x128xf32>, vector<32x128xf32> -> vector<32x128xf32>
    %c0_14 = arith.constant 0 : index
    %c1_15 = arith.constant 1 : index
    %c0_16 = arith.constant 0 : index
    %9 = vector.load %arg18[%c0_14, %c1_15, %c0_16] : memref<2x18x64xf32, #tpu.memory_space<vmem>>, vector<2x16x64xf32>
    %10 = vector.shape_cast %9 : vector<2x16x64xf32> to vector<32x64xf32>
    %c1_17 = arith.constant 1 : index
    %c0_18 = arith.constant 0 : index
    %c0_19 = arith.constant 0 : index
    %11 = vector.load %arg3[%c1_17, %c0_18, %c0_19] : memref<3x64x128xf32, #tpu.memory_space<vmem>>, vector<1x64x128xf32>
    %12 = vector.shape_cast %11 : vector<1x64x128xf32> to vector<64x128xf32>
    %cst_20 = arith.constant dense<0.000000e+00> : vector<32x128xf32>
    %13 = tpu.matmul %10, %12, %cst_20 {dimension_numbers = #tpu.dot_dimension_numbers<[1], [0], [0], [1], [0, 0, 1, 1], [], []>} : vector<32x64xf32>, vector<64x128xf32>, vector<32x128xf32> -> vector<32x128xf32>
    %14 = arith.addf %8, %13 : vector<32x128xf32>
    %c0_21 = arith.constant 0 : index
    %c2 = arith.constant 2 : index
    %c0_22 = arith.constant 0 : index
    %15 = vector.load %arg18[%c0_21, %c2, %c0_22] : memref<2x18x64xf32, #tpu.memory_space<vmem>>, vector<2x16x64xf32>
    %16 = vector.shape_cast %15 : vector<2x16x64xf32> to vector<32x64xf32>
    %c2_23 = arith.constant 2 : index
    %c0_24 = arith.constant 0 : index
    %c0_25 = arith.constant 0 : index
    %17 = vector.load %arg3[%c2_23, %c0_24, %c0_25] : memref<3x64x128xf32, #tpu.memory_space<vmem>>, vector<1x64x128xf32>
    %18 = vector.shape_cast %17 : vector<1x64x128xf32> to vector<64x128xf32>
    %cst_26 = arith.constant dense<0.000000e+00> : vector<32x128xf32>
    %19 = tpu.matmul %16, %18, %cst_26 {dimension_numbers = #tpu.dot_dimension_numbers<[1], [0], [0], [1], [0, 0, 1, 1], [], []>} : vector<32x64xf32>, vector<64x128xf32>, vector<32x128xf32> -> vector<32x128xf32>
    %20 = arith.addf %14, %19 : vector<32x128xf32>
    %c0_27 = arith.constant 0 : index
    %c0_28 = arith.constant 0 : index
    %21 = vector.load %arg4[%c0_27, %c0_28] : memref<1x128xf32, #tpu.memory_space<vmem>>, vector<1x128xf32>
    %22 = vector.broadcast %21 : vector<1x128xf32> to vector<32x128xf32>
    %23 = arith.mulf %20, %22 : vector<32x128xf32>
    %c0_29 = arith.constant 0 : index
    %c0_30 = arith.constant 0 : index
    %24 = vector.load %arg5[%c0_29, %c0_30] : memref<1x128xf32, #tpu.memory_space<vmem>>, vector<1x128xf32>
    %25 = vector.broadcast %24 : vector<1x128xf32> to vector<32x128xf32>
    %26 = arith.addf %23, %25 : vector<32x128xf32>
    %cst_31 = arith.constant 0.000000e+00 : f32
    %27 = vector.broadcast %cst_31 : f32 to vector<32x128xf32>
    %28 = arith.maximumf %26, %27 : vector<32x128xf32>
    %c0_32 = arith.constant 0 : index
    %c0_33 = arith.constant 0 : index
    %29 = vector.load %arg6[%c0_32, %c0_33] : memref<128x128xf32, #tpu.memory_space<vmem>>, vector<128x128xf32>
    %cst_34 = arith.constant dense<0.000000e+00> : vector<32x128xf32>
    %30 = tpu.matmul %28, %29, %cst_34 {dimension_numbers = #tpu.dot_dimension_numbers<[1], [0], [0], [1], [0, 0, 1, 1], [], []>} : vector<32x128xf32>, vector<128x128xf32>, vector<32x128xf32> -> vector<32x128xf32>
    %c0_35 = arith.constant 0 : index
    %c0_36 = arith.constant 0 : index
    %31 = vector.load %arg7[%c0_35, %c0_36] : memref<1x128xf32, #tpu.memory_space<vmem>>, vector<1x128xf32>
    %32 = vector.broadcast %31 : vector<1x128xf32> to vector<32x128xf32>
    %33 = arith.mulf %30, %32 : vector<32x128xf32>
    %c0_37 = arith.constant 0 : index
    %c0_38 = arith.constant 0 : index
    %34 = vector.load %arg8[%c0_37, %c0_38] : memref<1x128xf32, #tpu.memory_space<vmem>>, vector<1x128xf32>
    %35 = vector.broadcast %34 : vector<1x128xf32> to vector<32x128xf32>
    %36 = arith.addf %33, %35 : vector<32x128xf32>
    %cst_39 = arith.constant 0.000000e+00 : f32
    %37 = vector.broadcast %cst_39 : f32 to vector<32x128xf32>
    %38 = arith.maximumf %36, %37 : vector<32x128xf32>
    %cst_40 = arith.constant 0.000000e+00 : f32
    %39 = vector.broadcast %cst_40 : f32 to vector<2x10x32xf32>
    %c0_41 = arith.constant 0 : index
    %c0_42 = arith.constant 0 : index
    %c0_43 = arith.constant 0 : index
    %40 = vector.load %arg19[%c0_41, %c0_42, %c0_43] : memref<2x10x32xf32, #tpu.memory_space<vmem>>, vector<2x10x32xf32>
    tpu.vector_store %arg19[%c0_41, %c0_42, %c0_43], %39 {strides = array<i32>} : memref<2x10x32xf32, #tpu.memory_space<vmem>>, vector<2x10x32xf32>,
    %c0_44 = arith.constant 0 : index
    %c0_45 = arith.constant 0 : index
    %c0_46 = arith.constant 0 : index
    %41 = vector.load %arg2[%c0_44, %c0_45, %c0_46] : memref<2x8x32xf32, #tpu.memory_space<vmem>>, vector<2x8x32xf32>
    %c0_47 = arith.constant 0 : index
    %c1_48 = arith.constant 1 : index
    %c0_49 = arith.constant 0 : index
    %42 = vector.load %arg19[%c0_47, %c1_48, %c0_49] : memref<2x10x32xf32, #tpu.memory_space<vmem>>, vector<2x8x32xf32>
    tpu.vector_store %arg19[%c0_47, %c1_48, %c0_49], %41 {strides = array<i32>} : memref<2x10x32xf32, #tpu.memory_space<vmem>>, vector<2x8x32xf32>,
    %c0_50 = arith.constant 0 : index
    %c0_51 = arith.constant 0 : index
    %c0_52 = arith.constant 0 : index
    %43 = vector.load %arg19[%c0_50, %c0_51, %c0_52] : memref<2x10x32xf32, #tpu.memory_space<vmem>>, vector<2x8x32xf32>
    %44 = vector.shape_cast %43 : vector<2x8x32xf32> to vector<16x32xf32>
    %c0_53 = arith.constant 0 : index
    %c0_54 = arith.constant 0 : index
    %c0_55 = arith.constant 0 : index
    %45 = vector.load %arg9[%c0_53, %c0_54, %c0_55] : memref<3x32x64xf32, #tpu.memory_space<vmem>>, vector<1x32x64xf32>
    %46 = vector.shape_cast %45 : vector<1x32x64xf32> to vector<32x64xf32>
    %cst_56 = arith.constant dense<0.000000e+00> : vector<16x64xf32>
    %47 = tpu.matmul %44, %46, %cst_56 {dimension_numbers = #tpu.dot_dimension_numbers<[1], [0], [0], [1], [0, 0, 1, 1], [], []>} : vector<16x32xf32>, vector<32x64xf32>, vector<16x64xf32> -> vector<16x64xf32>
    %c0_57 = arith.constant 0 : index
    %c1_58 = arith.constant 1 : index
    %c0_59 = arith.constant 0 : index
    %48 = vector.load %arg19[%c0_57, %c1_58, %c0_59] : memref<2x10x32xf32, #tpu.memory_space<vmem>>, vector<2x8x32xf32>
    %49 = vector.shape_cast %48 : vector<2x8x32xf32> to vector<16x32xf32>
    %c1_60 = arith.constant 1 : index
    %c0_61 = arith.constant 0 : index
    %c0_62 = arith.constant 0 : index
    %50 = vector.load %arg9[%c1_60, %c0_61, %c0_62] : memref<3x32x64xf32, #tpu.memory_space<vmem>>, vector<1x32x64xf32>
    %51 = vector.shape_cast %50 : vector<1x32x64xf32> to vector<32x64xf32>
    %cst_63 = arith.constant dense<0.000000e+00> : vector<16x64xf32>
    %52 = tpu.matmul %49, %51, %cst_63 {dimension_numbers = #tpu.dot_dimension_numbers<[1], [0], [0], [1], [0, 0, 1, 1], [], []>} : vector<16x32xf32>, vector<32x64xf32>, vector<16x64xf32> -> vector<16x64xf32>
    %53 = arith.addf %47, %52 : vector<16x64xf32>
    %c0_64 = arith.constant 0 : index
    %c2_65 = arith.constant 2 : index
    %c0_66 = arith.constant 0 : index
    %54 = vector.load %arg19[%c0_64, %c2_65, %c0_66] : memref<2x10x32xf32, #tpu.memory_space<vmem>>, vector<2x8x32xf32>
    %55 = vector.shape_cast %54 : vector<2x8x32xf32> to vector<16x32xf32>
    %c2_67 = arith.constant 2 : index
    %c0_68 = arith.constant 0 : index
    %c0_69 = arith.constant 0 : index
    %56 = vector.load %arg9[%c2_67, %c0_68, %c0_69] : memref<3x32x64xf32, #tpu.memory_space<vmem>>, vector<1x32x64xf32>
    %57 = vector.shape_cast %56 : vector<1x32x64xf32> to vector<32x64xf32>
    %cst_70 = arith.constant dense<0.000000e+00> : vector<16x64xf32>
    %58 = tpu.matmul %55, %57, %cst_70 {dimension_numbers = #tpu.dot_dimension_numbers<[1], [0], [0], [1], [0, 0, 1, 1], [], []>} : vector<16x32xf32>, vector<32x64xf32>, vector<16x64xf32> -> vector<16x64xf32>
    %59 = arith.addf %53, %58 : vector<16x64xf32>
    %c0_71 = arith.constant 0 : index
    %c0_72 = arith.constant 0 : index
    %60 = vector.load %arg10[%c0_71, %c0_72] : memref<1x64xf32, #tpu.memory_space<vmem>>, vector<1x64xf32>
    %61 = vector.broadcast %60 : vector<1x64xf32> to vector<16x64xf32>
    %62 = arith.mulf %59, %61 : vector<16x64xf32>
    %c0_73 = arith.constant 0 : index
    %c0_74 = arith.constant 0 : index
    %63 = vector.load %arg11[%c0_73, %c0_74] : memref<1x64xf32, #tpu.memory_space<vmem>>, vector<1x64xf32>
    %64 = vector.broadcast %63 : vector<1x64xf32> to vector<16x64xf32>
    %65 = arith.addf %62, %64 : vector<16x64xf32>
    %cst_75 = arith.constant 0.000000e+00 : f32
    %66 = vector.broadcast %cst_75 : f32 to vector<16x64xf32>
    %67 = arith.maximumf %65, %66 : vector<16x64xf32>
    %c0_76 = arith.constant 0 : index
    %c0_77 = arith.constant 0 : index
    %68 = vector.load %arg12[%c0_76, %c0_77] : memref<64x64xf32, #tpu.memory_space<vmem>>, vector<64x64xf32>
    %cst_78 = arith.constant dense<0.000000e+00> : vector<16x64xf32>
    %69 = tpu.matmul %67, %68, %cst_78 {dimension_numbers = #tpu.dot_dimension_numbers<[1], [0], [0], [1], [0, 0, 1, 1], [], []>} : vector<16x64xf32>, vector<64x64xf32>, vector<16x64xf32> -> vector<16x64xf32>
    %c0_79 = arith.constant 0 : index
    %c0_80 = arith.constant 0 : index
    %70 = vector.load %arg13[%c0_79, %c0_80] : memref<1x64xf32, #tpu.memory_space<vmem>>, vector<1x64xf32>
    %71 = vector.broadcast %70 : vector<1x64xf32> to vector<16x64xf32>
    %72 = arith.mulf %69, %71 : vector<16x64xf32>
    %c0_81 = arith.constant 0 : index
    %c0_82 = arith.constant 0 : index
    %73 = vector.load %arg14[%c0_81, %c0_82] : memref<1x64xf32, #tpu.memory_space<vmem>>, vector<1x64xf32>
    %74 = vector.broadcast %73 : vector<1x64xf32> to vector<16x64xf32>
    %75 = arith.addf %72, %74 : vector<16x64xf32>
    %76 = arith.negf %75 : vector<16x64xf32>
    %77 = math.exp %76 : vector<16x64xf32>
    %cst_83 = arith.constant 1.000000e+00 : f32
    %78 = vector.broadcast %cst_83 : f32 to vector<16x64xf32>
    %79 = arith.addf %78, %77 : vector<16x64xf32>
    %80 = arith.divf %78, %79 : vector<16x64xf32>
    %c0_84 = arith.constant 0 : index
    %c0_85 = arith.constant 0 : index
    %81 = vector.load %arg15[%c0_84, %c0_85] : memref<32x16xf32, #tpu.memory_space<vmem>>, vector<32x16xf32>
    %cst_86 = arith.constant dense<0.000000e+00> : vector<32x64xf32>
    %82 = tpu.matmul %81, %80, %cst_86 {dimension_numbers = #tpu.dot_dimension_numbers<[1], [0], [0], [1], [0, 0, 1, 1], [], []>} : vector<32x16xf32>, vector<16x64xf32>, vector<32x64xf32> -> vector<32x64xf32>
    %c0_87 = arith.constant 0 : index
    %c0_88 = arith.constant 0 : index
    %83 = vector.load %arg16[%c0_87, %c0_88] : memref<64x128xf32, #tpu.memory_space<vmem>>, vector<64x128xf32>
    %cst_89 = arith.constant dense<0.000000e+00> : vector<32x128xf32>
    %84 = tpu.matmul %82, %83, %cst_89 {dimension_numbers = #tpu.dot_dimension_numbers<[1], [0], [0], [1], [0, 0, 1, 1], [], []>} : vector<32x64xf32>, vector<64x128xf32>, vector<32x128xf32> -> vector<32x128xf32>
    %85 = arith.mulf %84, %38 : vector<32x128xf32>
    %86 = arith.addf %85, %84 : vector<32x128xf32>
    %c0_90 = arith.constant 0 : index
    %c0_91 = arith.constant 0 : index
    %87 = vector.load %arg17[%c0_90, %c0_91] : memref<32x128xf32, #tpu.memory_space<vmem>>, vector<32x128xf32>
    tpu.vector_store %arg17[%c0_90, %c0_91], %86 {strides = array<i32>} : memref<32x128xf32, #tpu.memory_space<vmem>>, vector<32x128xf32>,
    return
  }
  func.func @transform_0(%arg0: i32) -> (i32, i32, i32) {
    %c0_i32 = arith.constant 0 : i32
    %c0_i32_0 = arith.constant 0 : i32
    %c0_i32_1 = arith.constant 0 : i32
    %c0_i32_2 = arith.constant 0 : i32
    return %c0_i32, %c0_i32_0, %c0_i32_1 : i32, i32, i32
  }
  func.func @transform_1(%arg0: i32) -> (i32, i32, i32) {
    %c0_i32 = arith.constant 0 : i32
    %c0_i32_0 = arith.constant 0 : i32
    %c0_i32_1 = arith.constant 0 : i32
    %c0_i32_2 = arith.constant 0 : i32
    return %c0_i32, %c0_i32_0, %c0_i32_1 : i32, i32, i32
  }
  func.func @transform_2(%arg0: i32) -> (i32, i32, i32) {
    %c0_i32 = arith.constant 0 : i32
    %c0_i32_0 = arith.constant 0 : i32
    %c0_i32_1 = arith.constant 0 : i32
    %c0_i32_2 = arith.constant 0 : i32
    return %c0_i32, %c0_i32_0, %c0_i32_1 : i32, i32, i32
  }
  func.func @transform_3(%arg0: i32) -> (i32, i32) {
    %c0_i32 = arith.constant 0 : i32
    %c0_i32_0 = arith.constant 0 : i32
    %c0_i32_1 = arith.constant 0 : i32
    return %c0_i32, %c0_i32_0 : i32, i32
  }
  func.func @transform_4(%arg0: i32) -> (i32, i32) {
    %c0_i32 = arith.constant 0 : i32
    %c0_i32_0 = arith.constant 0 : i32
    %c0_i32_1 = arith.constant 0 : i32
    return %c0_i32, %c0_i32_0 : i32, i32
  }
  func.func @transform_5(%arg0: i32) -> (i32, i32) {
    %c0_i32 = arith.constant 0 : i32
    %c0_i32_0 = arith.constant 0 : i32
    %c0_i32_1 = arith.constant 0 : i32
    return %c0_i32, %c0_i32_0 : i32, i32
  }
  func.func @transform_6(%arg0: i32) -> (i32, i32) {
    %c0_i32 = arith.constant 0 : i32
    %c0_i32_0 = arith.constant 0 : i32
    %c0_i32_1 = arith.constant 0 : i32
    return %c0_i32, %c0_i32_0 : i32, i32
  }
  func.func @transform_7(%arg0: i32) -> (i32, i32) {
    %c0_i32 = arith.constant 0 : i32
    %c0_i32_0 = arith.constant 0 : i32
    %c0_i32_1 = arith.constant 0 : i32
    return %c0_i32, %c0_i32_0 : i32, i32
  }
  func.func @transform_8(%arg0: i32) -> (i32, i32, i32) {
    %c0_i32 = arith.constant 0 : i32
    %c0_i32_0 = arith.constant 0 : i32
    %c0_i32_1 = arith.constant 0 : i32
    %c0_i32_2 = arith.constant 0 : i32
    return %c0_i32, %c0_i32_0, %c0_i32_1 : i32, i32, i32
  }
  func.func @transform_9(%arg0: i32) -> (i32, i32) {
    %c0_i32 = arith.constant 0 : i32
    %c0_i32_0 = arith.constant 0 : i32
    %c0_i32_1 = arith.constant 0 : i32
    return %c0_i32, %c0_i32_0 : i32, i32
  }
  func.func @transform_10(%arg0: i32) -> (i32, i32) {
    %c0_i32 = arith.constant 0 : i32
    %c0_i32_0 = arith.constant 0 : i32
    %c0_i32_1 = arith.constant 0 : i32
    return %c0_i32, %c0_i32_0 : i32, i32
  }
  func.func @transform_11(%arg0: i32) -> (i32, i32) {
    %c0_i32 = arith.constant 0 : i32
    %c0_i32_0 = arith.constant 0 : i32
    %c0_i32_1 = arith.constant 0 : i32
    return %c0_i32, %c0_i32_0 : i32, i32
  }
  func.func @transform_12(%arg0: i32) -> (i32, i32) {
    %c0_i32 = arith.constant 0 : i32
    %c0_i32_0 = arith.constant 0 : i32
    %c0_i32_1 = arith.constant 0 : i32
    return %c0_i32, %c0_i32_0 : i32, i32
  }
  func.func @transform_13(%arg0: i32) -> (i32, i32) {
    %c0_i32 = arith.constant 0 : i32
    %c0_i32_0 = arith.constant 0 : i32
    %c0_i32_1 = arith.constant 0 : i32
    return %c0_i32, %c0_i32_0 : i32, i32
  }
  func.func @transform_14(%arg0: i32) -> (i32, i32) {
    %c0_i32 = arith.constant 0 : i32
    %c0_i32_0 = arith.constant 0 : i32
    %c0_i32_1 = arith.constant 0 : i32
    return %c0_i32, %c0_i32_0 : i32, i32
  }
  func.func @transform_15(%arg0: i32) -> (i32, i32) {
    %c0_i32 = arith.constant 0 : i32
    %c0_i32_0 = arith.constant 0 : i32
    %c0_i32_1 = arith.constant 0 : i32
    return %c0_i32, %c0_i32_0 : i32, i32
  }
  func.func @transform_16(%arg0: i32) -> (i32, i32) {
    %c0_i32 = arith.constant 0 : i32
    %c0_i32_0 = arith.constant 0 : i32
    %c0_i32_1 = arith.constant 0 : i32
    return %c0_i32, %c0_i32_0 : i32, i32
  }
}

</mosaic_0001>

<bundles_post_ra>
// kernel: tile.43
= control target key start
LH: loop header
LB: loop body
LE: loop exit
PB: predicated region body
PF: predicated region fallthrough
CT: control target
= control target key end

     0   :  { %s28_s0 = inlined_call_operand.vmem [shape: f32[8], index: 0, kind: input, shape index: {}]   ;;  %s29_s1 = inlined_call_operand.vmem [shape: f32[16,8], index: 1, kind: output, shape index: {}]  }
   0x1   :  { %v4_v0 = vld [vmem:[%s28_s0] ss:$0 sm:$0xff] }
   0x2   :  { %5 = vst [vmem:[%s29_s1] sm:$0xff] %v4_v0  ;;  %8 = vst [vmem:[%s29_s1 + $0x8] sm:$0xff] %v4_v0 }

// kernel: tile.44
= control target key start
LH: loop header
LB: loop body
LE: loop exit
PB: predicated region body
PF: predicated region fallthrough
CT: control target
= control target key end

     0   :  { %s131_s10 = smov 120   ;;  %s132_s11 = smov 104   ;;  %vm3_vm0 = vcmask 64512   ;;  %vm9_vm1 = vcmask 1048512   ;;  %vm15_vm2 = vcmask 982912   ;;  %vm21_vm3 = vcmask 917312   ;;  %s207_s0 = inlined_call_operand.vmem [shape: f32[16,8], index: 0, kind: input, shape index: {}]   ;;  %s208_s1 = inlined_call_operand.vmem [shape: f32[1,128], index: 1, kind: output, shape index: {}]  }
   0x1   :  { %v101_v0 = vld [vmem:[%s207_s0 + $0xf] sm:$0x1]   ;;  %v103_v1 = vld [vmem:[%s207_s0 + $0xd] sm:$0x1]   ;;  %v102_v2 = vld [vmem:[%s207_s0 + $0xe] sm:$0x1]  }
   0x2   :  { %7 = vrot.lane.b32.xlu0 %v101_v0, %s131_s10  ;;  %19 = vrot.lane.b32.xlu1 %v103_v1, %s132_s11  ;;  %v104_v3 = vld [vmem:[%s207_s0 + $0xc] sm:$0x1]   ;;  %s133_s16 = smov 112   ;;  %s134_s17 = smov 96   ;;  %v105_v4 = vld [vmem:[%s207_s0 + $0xb] sm:$0x1]  }
   0x3   :  { %v106_v5 = vld [vmem:[%s207_s0 + $0xa] sm:$0x1]   ;;  %v2_v6 = vld [vmem:[%s207_s0] sm:$0x1]   ;;  %s135_s24 = smov 88   ;;  %s136_s25 = smov 80  }
   0x4   :  { %4 = vst.msk [vmem:[#allocation0] sm:$0x1] %vm3_vm0, %v2_v6   ;;  %v107_v7 = vld [vmem:[%s207_s0 + $0x9] sm:$0x1]   ;;  %v108_v8 = vld [vmem:[%s207_s0 + $0x8] sm:$0x1]  }
   0x5   :  { %s137_s30 = smov 72   ;;  %s138_s2 = smov 64   ;;  %v109_v9 = vld [vmem:[%s207_s0 + $0x7] sm:$0x1]   ;;  %v110_v10 = vld [vmem:[%s207_s0 + $0x6] sm:$0x1]  }
   0x6   :  { %13 = vrot.lane.b32.xlu0 %v102_v2, %s133_s16  ;;  %25 = vrot.lane.b32.xlu1 %v104_v3, %s134_s17  ;;  %s139_s7 = smov 56   ;;  %s140_s8 = smov 48   ;;  %v111_v11 = vld [vmem:[%s207_s0 + $0x5] sm:$0x1]   ;;  %v112_v12 = vld [vmem:[%s207_s0 + $0x4] sm:$0x1]  }
   0x7   :  { %s141_s13 = smov 40   ;;  %s142_s14 = smov 32   ;;  %v113_v13 = vld [vmem:[%s207_s0 + $0x3] sm:$0x1]   ;;  %v114_v14 = vld [vmem:[%s207_s0 + $0x2] sm:$0x1]  }
   0x8   :  { %s143_s19 = smov 24   ;;  %s144_s20 = smov 16   ;;  %v115_v15 = vld [vmem:[%s207_s0 + $0x1] sm:$0x1]   ;;  %vm27_vm4 = vcmask 851712   ;;  %vm33_vm5 = vcmask 786112  }
   0x9   :  { %s145_s0 = smov 8   ;;  %vm39_vm6 = vcmask 720512   ;;  %vm45_vm7 = vcmask 654912   ;;  %vm51_vm8 = vcmask 589312   ;;  %vm57_vm9 = vcmask 523712  }
   0xa   :  { %31 = vrot.lane.b32.xlu0 %v105_v4, %s135_s24  ;;  %37 = vrot.lane.b32.xlu1 %v106_v5, %s136_s25  ;;  %vm63_vm10 = vcmask 458112   ;;  %vm69_vm11 = vcmask 392512   ;;  %vm75_vm12 = vcmask 326912   ;;  %vm81_vm13 = vcmask 261312  }
   0xb   :  { %vm87_vm14 = vcmask 195712   ;;  %vm93_vm15 = vcmask 130112  }
   0xe   :  { %43 = vrot.lane.b32.xlu0 %v107_v7, %s137_s30  ;;  %49 = vrot.lane.b32.xlu1 %v108_v8, %s138_s2 }
  0x12   :  { %55 = vrot.lane.b32.xlu0 %v109_v9, %s139_s7  ;;  %61 = vrot.lane.b32.xlu1 %v110_v10, %s140_s8 }
  0x16   :  { %67 = vrot.lane.b32.xlu0 %v111_v11, %s141_s13  ;;  %73 = vrot.lane.b32.xlu1 %v112_v12, %s142_s14 }
  0x1a   :  { %79 = vrot.lane.b32.xlu0 %v113_v13, %s143_s19  ;;  %85 = vrot.lane.b32.xlu1 %v114_v14, %s144_s20 }
  0x1e   :  { %91 = vrot.lane.b32.xlu0 %v115_v15, %s145_s0 }
  0x74   :  { %v8_v16 = vpop.permute.xlu0 %7   ;;  %v20_v17 = vpop.permute.xlu1 %19  }
  0x75   :  { %10 = vst.msk [vmem:[#allocation0] sm:$0x1] %vm9_vm1, %v8_v16  }
  0x78   :  { %v14_v18 = vpop.permute.xlu0 %13   ;;  %v26_v19 = vpop.permute.xlu1 %25  }
  0x79   :  { %16 = vst.msk [vmem:[#allocation0] sm:$0x1] %vm15_vm2, %v14_v18  }
  0x7a   :  { %22 = vst.msk [vmem:[#allocation0] sm:$0x1] %vm21_vm3, %v20_v17  }
  0x7b   :  { %28 = vst.msk [vmem:[#allocation0] sm:$0x1] %vm27_vm4, %v26_v19  }
  0x7c   :  { %v32_v20 = vpop.permute.xlu0 %31   ;;  %v38_v21 = vpop.permute.xlu1 %37  }
  0x7d   :  { %34 = vst.msk [vmem:[#allocation0] sm:$0x1] %vm33_vm5, %v32_v20  }
  0x7e   :  { %40 = vst.msk [vmem:[#allocation0] sm:$0x1] %vm39_vm6, %v38_v21  }
  0x80   :  { %v44_v22 = vpop.permute.xlu0 %43   ;;  %v50_v23 = vpop.permute.xlu1 %49  }
  0x81   :  { %46 = vst.msk [vmem:[#allocation0] sm:$0x1] %vm45_vm7, %v44_v22  }
  0x82   :  { %52 = vst.msk [vmem:[#allocation0] sm:$0x1] %vm51_vm8, %v50_v23  }
  0x84   :  { %v56_v24 = vpop.permute.xlu0 %55   ;;  %v62_v25 = vpop.permute.xlu1 %61  }
  0x85   :  { %58 = vst.msk [vmem:[#allocation0] sm:$0x1] %vm57_vm9, %v56_v24  }
  0x86   :  { %64 = vst.msk [vmem:[#allocation0] sm:$0x1] %vm63_vm10, %v62_v25  }
  0x88   :  { %v68_v26 = vpop.permute.xlu0 %67   ;;  %v74_v27 = vpop.permute.xlu1 %73  }
  0x89   :  { %70 = vst.msk [vmem:[#allocation0] sm:$0x1] %vm69_vm11, %v68_v26  }
  0x8a   :  { %76 = vst.msk [vmem:[#allocation0] sm:$0x1] %vm75_vm12, %v74_v27  }
  0x8c   :  { %v80_v28 = vpop.permute.xlu0 %79   ;;  %v86_v29 = vpop.permute.xlu1 %85  }
  0x8d   :  { %82 = vst.msk [vmem:[#allocation0] sm:$0x1] %vm81_vm13, %v80_v28  }
  0x8e   :  { %88 = vst.msk [vmem:[#allocation0] sm:$0x1] %vm87_vm14, %v86_v29  }
  0x90   :  { %v92_v30 = vpop.permute.xlu0 %91  }
  0x91   :  { %94 = vst.msk [vmem:[#allocation0] sm:$0x1] %vm93_vm15, %v92_v30  }
  0x98   :  { %v98_v31 = vld [vmem:[#allocation0] sm:$0x1] }
  0x99   :  { %100 = vst [vmem:[%s208_s1] sm:$0x1] %v98_v31 }

// kernel: tile.63
= control target key start
LH: loop header
LB: loop body
LE: loop exit
PB: predicated region body
PF: predicated region fallthrough
CT: control target
= control target key end

     0   :  { %s22_s0 = inlined_call_operand.vmem [shape: f32[8], index: 0, kind: input, shape index: {}]   ;;  %s23_s1 = inlined_call_operand.vmem [shape: f32[8,8], index: 1, kind: output, shape index: {}]  }
   0x1   :  { %v4_v0 = vld [vmem:[%s22_s0] ss:$0 sm:$0xff] }
   0x2   :  { %5 = vst [vmem:[%s23_s1] sm:$0xff] %v4_v0 }

// kernel: tile.64
= control target key start
LH: loop header
LB: loop body
LE: loop exit
PB: predicated region body
PF: predicated region fallthrough
CT: control target
= control target key end

     0   :  { %s67_s10 = smov 56   ;;  %s68_s11 = smov 40   ;;  %vm3_vm0 = vcmask 64512   ;;  %vm9_vm1 = vcmask 523712   ;;  %vm15_vm2 = vcmask 458112   ;;  %vm21_vm3 = vcmask 392512   ;;  %s111_s0 = inlined_call_operand.vmem [shape: f32[8,8], index: 0, kind: input, shape index: {}]   ;;  %s112_s1 = inlined_call_operand.vmem [shape: f32[1,64], index: 1, kind: output, shape index: {}]  }
   0x1   :  { %v53_v0 = vld [vmem:[%s111_s0 + $0x7] sm:$0x1]   ;;  %v55_v1 = vld [vmem:[%s111_s0 + $0x5] sm:$0x1]   ;;  %v54_v2 = vld [vmem:[%s111_s0 + $0x6] sm:$0x1]  }
   0x2   :  { %7 = vrot.lane.b32.xlu0 %v53_v0, %s67_s10  ;;  %19 = vrot.lane.b32.xlu1 %v55_v1, %s68_s11  ;;  %v56_v3 = vld [vmem:[%s111_s0 + $0x4] sm:$0x1]   ;;  %v2_v4 = vld [vmem:[%s111_s0] sm:$0x1]   ;;  %s69_s18 = smov 48   ;;  %s70_s19 = smov 32  }
   0x3   :  { %4 = vst.msk [vmem:[#allocation0] sm:$0x1] %vm3_vm0, %v2_v4   ;;  %v57_v5 = vld [vmem:[%s111_s0 + $0x3] sm:$0x1]   ;;  %v58_v6 = vld [vmem:[%s111_s0 + $0x2] sm:$0x1]  }
   0x4   :  { %s71_s24 = smov 24   ;;  %s72_s25 = smov 16   ;;  %v59_v7 = vld [vmem:[%s111_s0 + $0x1] sm:$0x1]   ;;  %vm27_vm4 = vcmask 326912   ;;  %vm33_vm5 = vcmask 261312  }
   0x5   :  { %s73_s0 = smov 8   ;;  %vm39_vm6 = vcmask 195712   ;;  %vm45_vm7 = vcmask 130112  }
   0x6   :  { %13 = vrot.lane.b32.xlu0 %v54_v2, %s69_s18  ;;  %25 = vrot.lane.b32.xlu1 %v56_v3, %s70_s19 }
   0xa   :  { %31 = vrot.lane.b32.xlu0 %v57_v5, %s71_s24  ;;  %37 = vrot.lane.b32.xlu1 %v58_v6, %s72_s25 }
   0xe   :  { %43 = vrot.lane.b32.xlu0 %v59_v7, %s73_s0 }
  0x74   :  { %v8_v8 = vpop.permute.xlu0 %7   ;;  %v20_v9 = vpop.permute.xlu1 %19  }
  0x75   :  { %10 = vst.msk [vmem:[#allocation0] sm:$0x1] %vm9_vm1, %v8_v8  }
  0x78   :  { %v14_v10 = vpop.permute.xlu0 %13   ;;  %v26_v11 = vpop.permute.xlu1 %25  }
  0x79   :  { %16 = vst.msk [vmem:[#allocation0] sm:$0x1] %vm15_vm2, %v14_v10  }
  0x7a   :  { %22 = vst.msk [vmem:[#allocation0] sm:$0x1] %vm21_vm3, %v20_v9  }
  0x7b   :  { %28 = vst.msk [vmem:[#allocation0] sm:$0x1] %vm27_vm4, %v26_v11  }
  0x7c   :  { %v32_v12 = vpop.permute.xlu0 %31   ;;  %v38_v13 = vpop.permute.xlu1 %37  }
  0x7d   :  { %34 = vst.msk [vmem:[#allocation0] sm:$0x1] %vm33_vm5, %v32_v12  }
  0x7e   :  { %40 = vst.msk [vmem:[#allocation0] sm:$0x1] %vm39_vm6, %v38_v13  }
  0x80   :  { %v44_v14 = vpop.permute.xlu0 %43  }
  0x81   :  { %46 = vst.msk [vmem:[#allocation0] sm:$0x1] %vm45_vm7, %v44_v14  }
  0x88   :  { %v50_v15 = vld [vmem:[#allocation0] sm:$0x1] }
  0x89   :  { %52 = vst [vmem:[%s112_s1] sm:$0x1] %v50_v15 }

// kernel: squeeze_attention_block.1
= control target key start
LH: loop header
LB: loop body
LE: loop exit
PB: predicated region body
PF: predicated region fallthrough
CT: control target
= control target key end

     0   :  { %vm53_vm0 = vcmask 523264   ;;  %vm56_vm1 = vcmask 517120   ;;  %v1705_v3 = vmov 0.0   ;;  %vm555_vm2 = vcmask 261120   ;;  %s2123_s2 = inlined_call_operand.vmem [shape: f32[3,64,128], index: 2, kind: input, shape index: {}]   ;;  %s2124_s0 = inlined_call_operand.vmem [shape: f32[2,16,64], index: 0, kind: input, shape index: {}]   ;;  %s2125_s5 = inlined_call_operand.vmem [shape: f32[128,128], index: 5, kind: input, shape index: {}]   ;;  %s2126_s8 = inlined_call_operand.vmem [shape: f32[3,32,64], index: 8, kind: input, shape index: {}]   ;;  %s2127_s1 = inlined_call_operand.vmem [shape: f32[2,8,32], index: 1, kind: input, shape index: {}]   ;;  %s2128_s3 = inlined_call_operand.vmem [shape: f32[1,128], index: 3, kind: input, shape index: {}]   ;;  %s2129_s4 = inlined_call_operand.vmem [shape: f32[1,128], index: 4, kind: input, shape index: {}]   ;;  %s2130_s11 = inlined_call_operand.vmem [shape: f32[64,64], index: 11, kind: input, shape index: {}]   ;;  %s2131_s9 = inlined_call_operand.vmem [shape: f32[1,64], index: 9, kind: input, shape index: {}]   ;;  %s2132_s10 = inlined_call_operand.vmem [shape: f32[1,64], index: 10, kind: input, shape index: {}]   ;;  %s2133_s14 = inlined_call_operand.vmem [shape: f32[32,16], index: 14, kind: input, shape index: {}]   ;;  %s2134_s12 = inlined_call_operand.vmem [shape: f32[1,64], index: 12, kind: input, shape index: {}]   ;;  %s2135_s13 = inlined_call_operand.vmem [shape: f32[1,64], index: 13, kind: input, shape index: {}]   ;;  %s2136_s15 = inlined_call_operand.vmem [shape: f32[64,128], index: 15, kind: input, shape index: {}]   ;;  %s2137_s6 = inlined_call_operand.vmem [shape: f32[1,128], index: 6, kind: input, shape index: {}]   ;;  %s2138_s7 = inlined_call_operand.vmem [shape: f32[1,128], index: 7, kind: input, shape index: {}]   ;;  %s2139_s16 = inlined_call_operand.vmem [shape: f32[32,128], index: 16, kind: output, shape index: {}]  }
   0x1   :  { %2141 = sst [smem:[#allocation4_spill]] %s2123_s2  ;;  %54 = vst.msk [vmem:[#allocation2] sm:$0xff] %vm53_vm0, %v1705_v3  ;;  %55 = vst.msk [vmem:[#allocation2 + $0x8] sm:$0xff] %vm53_vm0, %v1705_v3  ;;  %v61_v9 = vld [vmem:[%s2124_s0] sm:$0xff]  ;;  %v62_v10 = vld [vmem:[%s2124_s0 + $0x8] sm:$0xff]  ;;  %vm557_vm3 = vcmask 254976  }
   0x2   :  { %s2142_s23 = sld [smem:[#allocation4_spill]]  ;;  %58 = vst.msk [vmem:[#allocation2 + $0x18] sm:$0xff] %vm53_vm0, %v1705_v3  ;;  %59 = vst.msk [vmem:[#allocation2 + $0x20] sm:$0xff] %vm53_vm0, %v1705_v3  ;;  %v63_v12 = vld [vmem:[%s2124_s0 + $0x10] sm:$0xff]  ;;  %v64_v15 = vld [vmem:[%s2124_s0 + $0x18] sm:$0xff]  ;;  %vm973_vm4 = vcmask 130048  }
   0x3   :  { %57 = vst.msk [vmem:[#allocation2 + $0x10] sm:$0x3] %vm56_vm1, %v1705_v3  ;;  %60 = vst.msk [vmem:[#allocation2 + $0x28] sm:$0x3] %vm56_vm1, %v1705_v3  ;;  %v428_v18 = vld [vmem:[%s2125_s5] sm:$0xff]  ;;  %v429_v19 = vld [vmem:[%s2125_s5 + $0x8] sm:$0xff] }
   0x4   :  { %65 = vst.msk [vmem:[#allocation2 + $0x1] sm:$0xff] %vm53_vm0, %v61_v9  ;;  %66 = vst.msk [vmem:[#allocation2 + $0x9] sm:$0xff] %vm53_vm0, %v62_v10  ;;  %v1592_v22 = vpack.c.bf16 %v429_v19, %v428_v18  ;;  %v430_v23 = vld [vmem:[%s2125_s5 + $0x10] sm:$0xff]  ;;  %v431_v24 = vld [vmem:[%s2125_s5 + $0x18] sm:$0xff] }
   0x5   :  { %67 = vst.msk [vmem:[#allocation2 + $0x19] sm:$0xff] %vm53_vm0, %v63_v12  ;;  %68 = vst.msk [vmem:[#allocation2 + $0x21] sm:$0xff] %vm53_vm0, %v64_v15  ;;  %v432_v25 = vld [vmem:[%s2125_s5 + $0x20] sm:$0xff]  ;;  %v1596_v27 = vpack.c.bf16 %v431_v24, %v430_v23  ;;  %v433_v28 = vld [vmem:[%s2125_s5 + $0x28] sm:$0xff] }
   0x6   :  { %1593 = vmatprep.subr.bf16.mxu1 %v1592_v22  ;;  %v1600_v31 = vpack.c.bf16 %v433_v28, %v432_v25  ;;  %v434_v32 = vld [vmem:[%s2125_s5 + $0x30] sm:$0xff]  ;;  %v435_v33 = vld [vmem:[%s2125_s5 + $0x38] sm:$0xff]  ;;  %v436_v40 = vld [vmem:[%s2125_s5 + $0x40] sm:$0xff]  ;;  %556 = vst.msk [vmem:[#allocation3] sm:$0xff] %vm555_vm2, %v1705_v3 }
   0x7   :  { %1595 = vmatpush3.bf16.msra.mxu1 %v1592_v22  ;;  %v1604_v39 = vpack.c.bf16 %v435_v33, %v434_v32  ;;  %v437_v41 = vld [vmem:[%s2125_s5 + $0x48] sm:$0xff]  ;;  %v438_v48 = vld [vmem:[%s2125_s5 + $0x50] sm:$0xff]  ;;  %v439_v49 = vld [vmem:[%s2125_s5 + $0x58] sm:$0xff]  ;;  %558 = vst.msk [vmem:[#allocation3 + $0x8] sm:$0x3] %vm557_vm3, %v1705_v3 }
   0x8   :  { %v1192_v0 = vld [vmem:[%s2142_s23 + $0x40] sm:$0xff]  ;;  %v1193_v1 = vld [vmem:[%s2142_s23 + $0x48] sm:$0xff]  ;;  %v1194_v2 = vld [vmem:[%s2142_s23 + $0x50] sm:$0xff]  ;;  %1597 = vmatprep.subr.bf16.mxu1 %v1596_v27  ;;  %v1608_v47 = vpack.c.bf16 %v437_v41, %v436_v40  ;;  %v1612_v53 = vpack.c.bf16 %v439_v49, %v438_v48  ;;  %560 = vst.msk [vmem:[#allocation3 + $0x18] sm:$0x3] %vm557_vm3, %v1705_v3 }
   0x9   :  { %v1544_v4 = vpack.c.bf16 %v1193_v1, %v1192_v0  ;;  %v1195_v5 = vld [vmem:[%s2142_s23 + $0x58] sm:$0xff]  ;;  %v1196_v7 = vld [vmem:[%s2142_s23 + $0x60] sm:$0xff]  ;;  %v1197_v8 = vld [vmem:[%s2142_s23 + $0x68] sm:$0xff]  ;;  %559 = vst.msk [vmem:[#allocation3 + $0x10] sm:$0xff] %vm555_vm2, %v1705_v3 }
   0xa   :  { %v1548_v6 = vpack.c.bf16 %v1195_v5, %v1194_v2  ;;  %v1552_v11 = vpack.c.bf16 %v1197_v8, %v1196_v7  ;;  %v1198_v13 = vld [vmem:[%s2142_s23 + $0x70] sm:$0xff]  ;;  %v1199_v14 = vld [vmem:[%s2142_s23 + $0x78] sm:$0xff]  ;;  %v73_v17 = vld [vmem:[%s2142_s23] sm:$0xff] }
   0xb   :  { %1545 = vmatprep.subr.bf16.mxu0 %v1544_v4  ;;  %v1556_v16 = vpack.c.bf16 %v1199_v14, %v1198_v13  ;;  %v81_v20 = vld [vmem:[#allocation2 + $0x1] sm:$0xff]  ;;  %v75_v29 = vld [vmem:[%s2142_s23 + $0x10] sm:$0xff]  ;;  %v76_v30 = vld [vmem:[%s2142_s23 + $0x18] sm:$0xff]  ;;  %1599 = vmatpush3.bf16.msra.mxu1 %v1596_v27 }
   0xc   :  { %1547 = vmatpush3.bf16.msra.mxu0 %v1544_v4  ;;  %v74_v21 = vld [vmem:[%s2142_s23 + $0x8] sm:$0xff]  ;;  %1372 = vmatprep.mubr.msk.f32.mxu0 %vm53_vm0, %v81_v20  ;;  %v1564_v35 = vpack.c.bf16 %v76_v30, %v75_v29  ;;  %v83_v36 = vld [vmem:[#allocation2 + $0x19] sm:$0xff]  ;;  %v79_v45 = vld [vmem:[%s2142_s23 + $0x30] sm:$0xff] }
   0xd   :  { %1549 = vmatprep.subr.bf16.mxu0 %v1548_v6  ;;  %v1560_v26 = vpack.c.bf16 %v74_v21, %v73_v17  ;;  %v82_v34 = vld [vmem:[#allocation2 + $0x9] sm:$0xff]  ;;  %v77_v37 = vld [vmem:[%s2142_s23 + $0x20] sm:$0xff]  ;;  %1601 = vmatprep.subr.bf16.mxu1 %v1600_v31  ;;  %v80_v46 = vld [vmem:[%s2142_s23 + $0x38] sm:$0xff] }
   0xe   :  { %v78_v38 = vld [vmem:[%s2142_s23 + $0x28] sm:$0xff]  ;;  %v69_v44 = vld [vmem:[#allocation2] sm:$0xff]  ;;  %v1572_v50 = vpack.c.bf16 %v80_v46, %v79_v45  ;;  %v1210_v55 = vld [vmem:[%s2142_s23 + $0x90] sm:$0xff] }
   0xf   :  { %v84_v42 = vld [vmem:[#allocation2 + $0x21] sm:$0xff]  ;;  %v1568_v43 = vpack.c.bf16 %v78_v38, %v77_v37  ;;  %1603 = vmatpush3.bf16.msra.mxu1 %v1600_v31  ;;  %v1211_v56 = vld [vmem:[%s2142_s23 + $0x98] sm:$0xff]  ;;  %v1214_v1 = vld [vmem:[%s2142_s23 + $0xb0] sm:$0xff] }
  0x10   :  { %1551 = vmatpush3.bf16.msra.mxu0 %v1548_v6  ;;  %1605 = vmatprep.subr.bf16.mxu1 %v1604_v39  ;;  %v1208_v51 = vld [vmem:[%s2142_s23 + $0x80] sm:$0xff]  ;;  %v1209_v52 = vld [vmem:[%s2142_s23 + $0x88] sm:$0xff]  ;;  %v1580_v58 = vpack.c.bf16 %v1211_v56, %v1210_v55  ;;  %v71_v59 = vld [vmem:[#allocation2 + $0x18] sm:$0xff] }
  0x11   :  { %1553 = vmatprep.subr.bf16.mxu0 %v1552_v11  ;;  %v1576_v54 = vpack.c.bf16 %v1209_v52, %v1208_v51  ;;  %v70_v57 = vld [vmem:[#allocation2 + $0x8] sm:$0xff]  ;;  %v1212_v60 = vld [vmem:[%s2142_s23 + $0xa0] sm:$0xff]  ;;  %v1215_v2 = vld [vmem:[%s2142_s23 + $0xb8] sm:$0xff] }
  0x12   :  { %v1213_v61 = vld [vmem:[%s2142_s23 + $0xa8] sm:$0xff]  ;;  %v72_v62 = vld [vmem:[#allocation2 + $0x20] sm:$0xff]  ;;  %v1588_v4 = vpack.c.bf16 %v1215_v2, %v1214_v1  ;;  %v443_v12 = vld [vmem:[%s2125_s5 + $0x78] sm:$0xff] }
  0x13   :  { %1607 = vmatpush3.bf16.msra.mxu1 %v1604_v39  ;;  %v1584_v63 = vpack.c.bf16 %v1213_v61, %v1212_v60  ;;  %v288_v0 = vld [vmem:[#allocation2 + $0x2] sm:$0xff]  ;;  %v289_v5 = vld [vmem:[#allocation2 + $0xa] sm:$0xff]  ;;  %v290_v6 = vld [vmem:[#allocation2 + $0x1a] sm:$0xff] }
  0x14   :  { %1555 = vmatpush3.bf16.msra.mxu0 %v1552_v11  ;;  %1609 = vmatprep.subr.bf16.mxu1 %v1608_v47  ;;  %v291_v7 = vld [vmem:[#allocation2 + $0x22] sm:$0xff]  ;;  %v442_v11 = vld [vmem:[%s2125_s5 + $0x70] sm:$0xff]  ;;  %v1227_v22 = vld [vmem:[%s2126_s8 + $0x38] sm:$0xff] }
  0x15   :  { %1557 = vmatprep.subr.bf16.mxu0 %v1556_v16  ;;  %v440_v8 = vld [vmem:[%s2125_s5 + $0x60] sm:$0xff]  ;;  %v441_v9 = vld [vmem:[%s2125_s5 + $0x68] sm:$0xff]  ;;  %v1620_v13 = vpack.c.bf16 %v443_v12, %v442_v11  ;;  %v1226_v3 = vld [vmem:[%s2126_s8 + $0x30] sm:$0xff] }
  0x16   :  { %v1616_v10 = vpack.c.bf16 %v441_v9, %v440_v8  ;;  %v567_v14 = vld [vmem:[%s2126_s8] sm:$0xff]  ;;  %v568_v15 = vld [vmem:[%s2126_s8 + $0x8] sm:$0xff]  ;;  %v1628_v23 = vpack.c.bf16 %v1227_v22, %v1226_v3  ;;  %v1234_v51 = vld [vmem:[%s2126_s8 + $0x50] sm:$0xff] }
  0x17   :  { %1611 = vmatpush3.bf16.msra.mxu1 %v1608_v47  ;;  %v561_v17 = vld [vmem:[%s2127_s1] sm:$0xff]  ;;  %v562_v18 = vld [vmem:[%s2127_s1 + $0x8] sm:$0xff]  ;;  %v1235_v52 = vld [vmem:[%s2126_s8 + $0x58] sm:$0xff] }
  0x18   :  { %1559 = vmatpush3.bf16.msra.mxu0 %v1556_v16  ;;  %1613 = vmatprep.subr.bf16.mxu1 %v1612_v53  ;;  %v1632_v16 = vpack.c.bf16 %v568_v15, %v567_v14  ;;  %563 = vst.msk [vmem:[#allocation3 + $0x1] sm:$0xff] %vm555_vm2, %v561_v17  ;;  %564 = vst.msk [vmem:[#allocation3 + $0x11] sm:$0xff] %vm555_vm2, %v562_v18  ;;  %v1224_v19 = vld [vmem:[%s2126_s8 + $0x20] sm:$0xff]  ;;  %v1225_v20 = vld [vmem:[%s2126_s8 + $0x28] sm:$0xff] }
  0x19   :  { %1561 = vmatprep.subr.bf16.mxu0 %v1560_v26  ;;  %v1624_v21 = vpack.c.bf16 %v1225_v20, %v1224_v19  ;;  %v1221_v28 = vld [vmem:[%s2129_s4] ss:$0 sm:$0xff]  ;;  %v1233_v46 = vld [vmem:[%s2126_s8 + $0x48] sm:$0xff]  ;;  %v852_v60 = vld [vmem:[%s2130_s11 + $0x10] sm:$0xff] }
  0x1a   :  { %v1232_v45 = vld [vmem:[%s2126_s8 + $0x40] sm:$0xff]  ;;  %v853_v61 = vld [vmem:[%s2130_s11 + $0x18] sm:$0xff]  ;;  %v855_v2 = vld [vmem:[%s2130_s11 + $0x28] sm:$0xff] }
  0x1b   :  { %1373 = vmatmul.mubr.msk.f32.vlgmr.msra.gmra.mrb[0].mxu0 %vm53_vm0, %v82_v34  ;;  %1615 = vmatpush3.bf16.msra.mxu1 %v1612_v53  ;;  %v854_v1 = vld [vmem:[%s2130_s11 + $0x20] sm:$0xff] }
  0x1c   :  { %1563 = vmatpush3.bf16.msra.mxu0 %v1560_v26  ;;  %1375 = vmatprep.mubr.msk.f32.mxu0 %vm53_vm0, %v83_v36  ;;  %v1220_v26 = vld [vmem:[%s2128_s3] ss:$0 sm:$0xff]  ;;  %v570_v36 = vld [vmem:[%s2126_s8 + $0x18] sm:$0xff] }
  0x1d   :  { %1565 = vmatprep.subr.bf16.mxu0 %v1564_v35  ;;  %1617 = vmatprep.subr.bf16.mxu1 %v1616_v10 }
  0x1f   :  { %1376 = vmatmul.mubr.msk.f32.gmra.mrb[2].mxu0 %vm53_vm0, %v84_v42  ;;  %1619 = vmatpush3.bf16.msra.mxu1 %v1616_v10  ;;  %v571_v24 = vld [vmem:[#allocation3 + $0x1] sm:$0xff]  ;;  %v572_v25 = vld [vmem:[#allocation3 + $0x11] sm:$0xff] }
  0x20   :  { %1567 = vmatpush3.bf16.msra.mxu0 %v1564_v35  ;;  %1394 = vmatprep.mubr.msk.f32.mxu0 %vm53_vm0, %v69_v44  ;;  %v569_v35 = vld [vmem:[%s2126_s8 + $0x10] sm:$0xff]  ;;  %v566_v53 = vld [vmem:[#allocation3 + $0x10] sm:$0xff] }
  0x21   :  { %1569 = vmatprep.subr.bf16.mxu0 %v1568_v43  ;;  %1621 = vmatprep.subr.bf16.mxu1 %v1620_v13  ;;  %v565_v49 = vld [vmem:[#allocation3] sm:$0xff]  ;;  %v741_v56 = vld [vmem:[#allocation3 + $0x12] sm:$0xff] }
  0x22   :  { %v740_v55 = vld [vmem:[#allocation3 + $0x2] sm:$0xff] }
  0x23   :  { %1623 = vmatpush3.bf16.msra.mxu1 %v1620_v13  ;;  %v1238_v13 = vld [vmem:[%s2131_s9] ss:$0 sm:$0xff] }
  0x24   :  { %1571 = vmatpush3.bf16.msra.mxu0 %v1568_v43  ;;  %1633 = vmatprep.subr.bf16.mxu1 %v1632_v16  ;;  %v1636_v43 = vpack.c.bf16 %v570_v36, %v569_v35 }
  0x25   :  { %1573 = vmatprep.subr.bf16.mxu0 %v1572_v50 }
  0x28   :  { %1575 = vmatpush3.bf16.msra.mxu0 %v1572_v50  ;;  %v1640_v50 = vpack.c.bf16 %v1233_v46, %v1232_v45  ;;  %v1074_v45 = vld [vmem:[%s2136_s15 + $0x18] sm:$0xff]  ;;  %v970_v46 = vld [vmem:[%s2133_s14 + $0x8] sm:$0xff] }
  0x29   :  { %1577 = vmatprep.subr.bf16.mxu0 %v1576_v54 }
  0x2b   :  { %1395 = vmatmul.mubr.msk.f32.vlgmr.msra.gmra.mrb[0].mxu0 %vm53_vm0, %v70_v57  ;;  %v850_v57 = vld [vmem:[%s2130_s11] sm:$0xff] }
  0x2c   :  { %1579 = vmatpush3.bf16.msra.mxu0 %v1576_v54  ;;  %1397 = vmatprep.mubr.msk.f32.mxu0 %vm53_vm0, %v71_v59  ;;  %v1644_v54 = vpack.c.bf16 %v1235_v52, %v1234_v51  ;;  %v972_v51 = vld [vmem:[%s2133_s14 + $0x18] sm:$0xff] }
  0x2d   :  { %1581 = vmatprep.subr.bf16.mxu0 %v1580_v58 }
  0x2f   :  { %1398 = vmatmul.mubr.msk.f32.gmra.mrb[2].mxu0 %vm53_vm0, %v72_v62  ;;  %v1652_v62 = vpack.c.bf16 %v853_v61, %v852_v60  ;;  %v1222_v60 = vld [vmem:[%s2137_s6] ss:$0 sm:$0xff] }
  0x30   :  { %1583 = vmatpush3.bf16.msra.mxu0 %v1580_v58  ;;  %1416 = vmatprep.mubr.msk.f32.mxu0 %vm53_vm0, %v288_v0  ;;  %v851_v58 = vld [vmem:[%s2130_s11 + $0x8] sm:$0xff] }
  0x31   :  { %1585 = vmatprep.subr.bf16.mxu0 %v1584_v63  ;;  %v1648_v59 = vpack.c.bf16 %v851_v58, %v850_v57 }
  0x34   :  { %1587 = vmatpush3.bf16.msra.mxu0 %v1584_v63 }
  0x35   :  { %1589 = vmatprep.subr.bf16.mxu0 %v1588_v4 }
  0x38   :  { %1591 = vmatpush3.bf16.msra.mxu0 %v1588_v4  ;;  %v1656_v4 = vpack.c.bf16 %v855_v2, %v854_v1 }
  0x39   :  { %1625 = vmatprep.subr.bf16.mxu0 %v1624_v21 }
  0x3b   :  { %1417 = vmatmul.mubr.msk.f32.vlgmr.msra.gmra.mrb[0].mxu0 %vm53_vm0, %v289_v5  ;;  %v856_v5 = vld [vmem:[%s2130_s11 + $0x30] sm:$0xff] }
  0x3c   :  { %1419 = vmatprep.mubr.msk.f32.mxu0 %vm53_vm0, %v290_v6  ;;  %1627 = vmatpush3.bf16.msra.mxu0 %v1624_v21  ;;  %v857_v6 = vld [vmem:[%s2130_s11 + $0x38] sm:$0xff] }
  0x3d   :  { %1629 = vmatprep.subr.bf16.mxu0 %v1628_v23 }
  0x3f   :  { %1420 = vmatmul.mubr.msk.f32.gmra.mrb[2].mxu0 %vm53_vm0, %v291_v7  ;;  %v1660_v7 = vpack.c.bf16 %v857_v6, %v856_v5 }
  0x40   :  { %1631 = vmatpush3.bf16.msra.mxu0 %v1628_v23  ;;  %1468 = vmatprep.mubr.msk.f32.mxu0 %vm555_vm2, %v571_v24  ;;  %v969_v23 = vld [vmem:[%s2133_s14] sm:$0xff] }
  0x41   :  { %1649 = vmatprep.subr.bf16.mxu0 %v1648_v59  ;;  %v1242_v24 = vld [vmem:[%s2134_s12] ss:$0 sm:$0xff] }
  0x43   :  { %1469 = vmatmul.mubr.msk.f32.vlgmr.msra.gmra.mrb[4].mxu0 %vm555_vm2, %v572_v25 }
  0x44   :  { %1651 = vmatpush3.bf16.msra.mxu0 %v1648_v59 }
  0x45   :  { %1653 = vmatprep.subr.bf16.mxu0 %v1652_v62 }
  0x48   :  { %1655 = vmatpush3.bf16.msra.mxu0 %v1652_v62  ;;  %v1223_v62 = vld [vmem:[%s2138_s7] ss:$0 sm:$0xff] }
  0x49   :  { %1657 = vmatprep.subr.bf16.mxu0 %v1656_v4 }
  0x4c   :  { %1659 = vmatpush3.bf16.msra.mxu0 %v1656_v4 }
  0x4d   :  { %1661 = vmatprep.subr.bf16.mxu0 %v1660_v7 }
  0x50   :  { %1663 = vmatpush3.bf16.msra.mxu0 %v1660_v7 }
 0x10e   :  { %v1418_v27 = vpop.f32.mrb[0].mxu0 }
 0x10f   :  { %v410_v29 = vmul.f32 %v1418_v27, %v1220_v26  ;;  %v379_v30 = vpop.f32.mrb[1].mxu0 }
 0x110   :  { %v409_v31 = vmul.f32 %v1220_v26, %v379_v30 }
 0x111   :  { %v421_v32 = vadd.f32 %v1221_v28, %v410_v29 }
 0x112   :  { %v1421_v33 = vpop.f32.mrb[2].mxu0  ;;  %v420_v34 = vadd.f32 %v1221_v28, %v409_v31 }
 0x113   :  { %v412_v37 = vmul.f32 %v1421_v33, %v1220_v26  ;;  %v389_v38 = vpop.f32.mrb[3].mxu0  ;;  %v425_v41 = vmax.f32 %v421_v32, 0.0 }
 0x114   :  { %v411_v39 = vmul.f32 %v1220_v26, %v389_v38  ;;  %v424_v40 = vmax.f32 %v420_v34, 0.0  ;;  %v1243_v26 = vld [vmem:[%s2135_s13] ss:$0 sm:$0xff] }
 0x115   :  { %v423_v42 = vadd.f32 %v1221_v28, %v412_v37  ;;  %v1071_v38 = vld [vmem:[%s2136_s15] sm:$0xff] }
 0x116   :  { %v422_v44 = vadd.f32 %v1221_v28, %v411_v39  ;;  %1454 = vmatprep.mubr.f32.mxu1 %v424_v40  ;;  %v1470_v63 = vpop.f32.mrb[4].mxu0  ;;  %v1072_v39 = vld [vmem:[%s2136_s15 + $0x8] sm:$0xff] }
 0x117   :  { %1455 = vmatmul.mubr.f32.vlgmr.msra.gmra.mrb[0].mxu1 %v425_v41  ;;  %v427_v48 = vmax.f32 %v423_v42, 0.0  ;;  %v650_v0 = vpop.f32.mrb[5].mxu0 }
 0x118   :  { %v426_v47 = vmax.f32 %v422_v44, 0.0  ;;  %1635 = vmatpush3.bf16.msra.mxu1 %v1632_v16  ;;  %v1239_v16 = vld [vmem:[%s2132_s10] ss:$0 sm:$0xff]  ;;  %v1073_v44 = vld [vmem:[%s2136_s15 + $0x10] sm:$0xff] }
 0x119   :  { %1637 = vmatprep.subr.bf16.mxu1 %v1636_v43 }
 0x11a   :  { %1457 = vmatprep.mubr.f32.mxu1 %v426_v47  ;;  %v971_v47 = vld [vmem:[%s2133_s14 + $0x10] sm:$0xff] }
 0x11b   :  { %1458 = vmatmul.mubr.f32.gmra.mrb[2].mxu1 %v427_v48  ;;  %v1672_v48 = vpack.c.bf16 %v1074_v45, %v1073_v44 }
 0x11c   :  { %1639 = vmatpush3.bf16.msra.mxu1 %v1636_v43  ;;  %1479 = vmatprep.mubr.msk.f32.mxu1 %vm555_vm2, %v565_v49  ;;  %v1668_v43 = vpack.c.bf16 %v1072_v39, %v1071_v38  ;;  %v1075_v49 = vld [vmem:[%s2136_s15 + $0x20] sm:$0xff] }
 0x11d   :  { %1641 = vmatprep.subr.bf16.mxu1 %v1640_v50 }
 0x11f   :  { %1480 = vmatmul.mubr.msk.f32.vlgmr.msra.gmra.mrb[4].mxu1 %vm555_vm2, %v566_v53  ;;  %v1077_v53 = vld [vmem:[%s2136_s15 + $0x30] sm:$0xff] }
 0x120   :  { %1643 = vmatpush3.bf16.msra.mxu1 %v1640_v50  ;;  %1490 = vmatprep.mubr.msk.f32.mxu1 %vm555_vm2, %v740_v55  ;;  %v1076_v50 = vld [vmem:[%s2136_s15 + $0x28] sm:$0xff] }
 0x121   :  { %1645 = vmatprep.subr.bf16.mxu1 %v1644_v54  ;;  %v1676_v52 = vpack.c.bf16 %v1076_v50, %v1075_v49 }
 0x124   :  { %1647 = vmatpush3.bf16.msra.mxu1 %v1644_v54  ;;  %v1078_v54 = vld [vmem:[%s2136_s15 + $0x38] sm:$0xff] }
 0x125   :  { %v1680_v55 = vpack.c.bf16 %v1078_v54, %v1077_v53 }
 0x127   :  { %1491 = vmatmul.mubr.msk.f32.vlgmr.msra.gmra.mrb[4].mxu1 %vm555_vm2, %v741_v56 }
 0x128   :  { %1516 = vmatprep.mubr.msk.f32.mxu1 %vm973_vm4, %v969_v23 }
 0x1ea   :  { %v2035_v8 = vpop.f32.mrb[0].mxu1 }
 0x1eb   :  { %v2037_v9 = vpop.f32.mrb[1].mxu1  ;;  %v537_v61 = vmul.f32 %v2035_v8, %v1222_v60 }
 0x1ee   :  { %v2039_v10 = vpop.f32.mrb[2].mxu1 }
 0x1ef   :  { %v2041_v11 = vpop.f32.mrb[3].mxu1  ;;  %v539_v1 = vmul.f32 %v2039_v10, %v1222_v60 }
 0x1f0   :  { %v538_v4 = vmul.f32 %v1222_v60, %v2041_v11 }
 0x1f1   :  { %v550_v6 = vadd.f32 %v1223_v62, %v539_v1 }
 0x1fa   :  { %v1492_v12 = vpop.f32.mrb[4].mxu1 }
 0x1fb   :  { %v1684_v14 = vadd.f32 %v1492_v12, %v1470_v63  ;;  %v819_v15 = vpop.f32.mrb[5].mxu1  ;;  %v536_v63 = vmul.f32 %v1222_v60, %v2037_v9  ;;  %v549_v12 = vadd.f32 %v1223_v62, %v538_v4 }
 0x1fc   :  { %v1685_v17 = vadd.f32 %v819_v15, %v650_v0  ;;  %v548_v0 = vadd.f32 %v1223_v62, %v537_v61 }
 0x1fd   :  { %v838_v18 = vmul.f32 %v1684_v14, %v1238_v13  ;;  %v547_v2 = vadd.f32 %v1223_v62, %v536_v63 }
 0x1fe   :  { %v837_v19 = vmul.f32 %v1685_v17, %v1238_v13  ;;  %v552_v5 = vmax.f32 %v548_v0, 0.0 }
 0x1ff   :  { %v847_v20 = vadd.f32 %v1239_v16, %v838_v18  ;;  %v551_v7 = vmax.f32 %v547_v2, 0.0 }
 0x200   :  { %v846_v21 = vadd.f32 %v1239_v16, %v837_v19  ;;  %v554_v16 = vmax.f32 %v550_v6, 0.0 }
 0x201   :  { %v849_v22 = vmax.f32 %v847_v20, 0.0  ;;  %v553_v20 = vmax.f32 %v549_v12, 0.0 }
 0x202   :  { %v848_v3 = vmax.f32 %v846_v21, 0.0 }
 0x204   :  { %1509 = vmatprep.mubr.msk.f32.mxu0 %vm53_vm0, %v848_v3 }
 0x205   :  { %1510 = vmatmul.mubr.msk.f32.vlgmr.msra.gmra.mrb[6].mxu0 %vm53_vm0, %v849_v22 }
 0x2d8   :  { %v1511_v25 = vpop.f32.mrb[6].mxu0 }
 0x2d9   :  { %v947_v27 = vmul.f32 %v1511_v25, %v1242_v24  ;;  %v930_v28 = vpop.f32.mrb[7].mxu0 }
 0x2da   :  { %v946_v29 = vmul.f32 %v1242_v24, %v930_v28 }
 0x2db   :  { %v956_v30 = vadd.f32 %v1243_v26, %v947_v27 }
 0x2dc   :  { %v955_v31 = vadd.f32 %v1243_v26, %v946_v29 }
 0x2dd   :  { %v1245_v32 = vmul.f32 -1.442695, %v956_v30 }
 0x2de   :  { %v1244_v33 = vmul.f32 -1.442695, %v955_v31 }
 0x2df   :  { %1697 = vpow2.f32 %v1245_v32 }
 0x2e0   :  { %1699 = vpow2.f32 %v1244_v33 }
 0x2e9   :  { %v1698_v34 = vpop.eup %1697 }
 0x2ea   :  { %v1700_v35 = vpop.eup %1699  ;;  %v964_v36 = vadd.f32 1.0, %v1698_v34 }
 0x2eb   :  { %v963_v37 = vadd.f32 1.0, %v1700_v35 }
 0x2ec   :  { %1701 = vrcp.f32 %v964_v36 }
 0x2ed   :  { %1703 = vrcp.f32 %v963_v37 }
 0x2f6   :  { %v1702_v40 = vpop.eup %1701 }
 0x2f7   :  { %v1704_v41 = vpop.eup %1703 }
 0x2f8   :  { %v1664_v42 = vpack.c.bf16 %v1702_v40, %v1704_v41 }
 0x2fa   :  { %1665 = vmatprep.subr.bf16.mxu1 %v1664_v42 }
 0x2fb   :  { %1667 = vmatpush3.bf16.msra.mxu1 %v1664_v42 }
 0x2fc   :  { %1669 = vmatprep.subr.bf16.mxu1 %v1668_v43 }
 0x2fe   :  { %1517 = vmatmul.mubr.msk.f32.vlgmr.msra.gmra.mrb[6].mxu1 %vm973_vm4, %v970_v46 }
 0x2ff   :  { %1519 = vmatprep.mubr.msk.f32.mxu1 %vm973_vm4, %v971_v47  ;;  %1671 = vmatpush3.bf16.msra.mxu1 %v1668_v43 }
 0x300   :  { %1673 = vmatprep.subr.bf16.mxu1 %v1672_v48 }
 0x302   :  { %1520 = vmatmul.mubr.msk.f32.gmra.mrb[8].mxu1 %vm973_vm4, %v972_v51 }
 0x303   :  { %1675 = vmatpush3.bf16.msra.mxu1 %v1672_v48 }
 0x304   :  { %1677 = vmatprep.subr.bf16.mxu1 %v1676_v52 }
 0x307   :  { %1679 = vmatpush3.bf16.msra.mxu1 %v1676_v52 }
 0x308   :  { %1681 = vmatprep.subr.bf16.mxu1 %v1680_v55 }
 0x30b   :  { %1683 = vmatpush3.bf16.msra.mxu1 %v1680_v55 }
 0x3d1   :  { %v1518_v56 = vpop.f32.mrb[6].mxu1 }
 0x3d2   :  { %v1052_v57 = vpop.f32.mrb[7].mxu1 }
 0x3d3   :  { %1538 = vmatprep.mubr.msk.f32.mxu1 %vm53_vm0, %v1052_v57 }
 0x3d4   :  { %1539 = vmatmul.mubr.msk.f32.vlgmr.msra.gmra.mrb[10].mxu1 %vm53_vm0, %v1518_v56 }
 0x3d5   :  { %v1521_v58 = vpop.f32.mrb[8].mxu1 }
 0x3d6   :  { %v1062_v59 = vpop.f32.mrb[9].mxu1 }
 0x3d7   :  { %1541 = vmatprep.mubr.msk.f32.mxu1 %vm53_vm0, %v1062_v59 }
 0x3d8   :  { %1542 = vmatmul.mubr.msk.f32.gmra.mrb[12].mxu1 %vm53_vm0, %v1521_v58 }
 0x4a7   :  { %v1540_v13 = vpop.f32.mrb[10].mxu1 }
 0x4a8   :  { %v1177_v14 = vmul.f32 %v1540_v13, %v552_v5  ;;  %v1157_v15 = vpop.f32.mrb[11].mxu1 }
 0x4a9   :  { %v1176_v8 = vmul.f32 %v1157_v15, %v551_v7 }
 0x4aa   :  { %v1181_v17 = vadd.f32 %v1540_v13, %v1177_v14 }
 0x4ab   :  { %v1180_v18 = vadd.f32 %v1176_v8, %v1157_v15  ;;  %v1543_v19 = vpop.f32.mrb[12].mxu1 }
 0x4ac   :  { %1185 = vst [vmem:[%s2139_s16 + $0x8] sm:$0xff] %v1181_v17  ;;  %v1179_v9 = vmul.f32 %v1543_v19, %v554_v16  ;;  %v1167_v10 = vpop.f32.mrb[13].mxu1 }
 0x4ad   :  { %1184 = vst [vmem:[%s2139_s16] sm:$0xff] %v1180_v18  ;;  %v1178_v11 = vmul.f32 %v1167_v10, %v553_v20 }
 0x4ae   :  { %v1183_v21 = vadd.f32 %v1543_v19, %v1179_v9 }
 0x4af   :  { %v1182_v3 = vadd.f32 %v1178_v11, %v1167_v10 }
 0x4b0   :  { %1187 = vst [vmem:[%s2139_s16 + $0x18] sm:$0xff] %v1183_v21 }
 0x4b1   :  { %1186 = vst [vmem:[%s2139_s16 + $0x10] sm:$0xff] %v1182_v3 }

</bundles_post_ra>
